<compile_context>
chip_gen: v5e
topology: v5e:2x2
jax: 0.10.0
libtpu: 0.0.40
codegen_flags: <defaults>
</compile_context>

<pallas_src>
import jax
import jax.numpy as jnp
from jax.experimental import pallas as pl
from jax.experimental.pallas import tpu as pltpu


NEG_SLOPE = 0.01  # PyTorch LeakyReLU default
BN_EPS = 1e-5     # PyTorch BatchNorm2d default

KH, KW = 6, 3
SH, SW = 4, 1
PAD = 1


# ---------------------------------------------------------------------------
# Pallas kernel: fused (C_out,K)@(K,TM) GEMM + per-channel shift + LeakyReLU
# ---------------------------------------------------------------------------
def _gemm_bn_lrelu_kernel(xcolT_ref, wf_ref, shift_ref, o_ref):
    # xcolT_ref: (K_pad, TM) bf16   -- streamed, lane-dense
    # wf_ref:    (C_out, K_pad) bf16 -- BN scale pre-folded, grid-resident
    # shift_ref: (C_out, 1) f32      -- conv bias + BN shift, pre-folded
    # o_ref:     (C_out, TM) f32     -- lane-dense output tile
    acc = jnp.dot(wf_ref[...], xcolT_ref[...],
                  preferred_element_type=jnp.float32)     # (C_out, TM) f32
    y = acc + shift_ref[...]                              # broadcast over lanes
    o_ref[...] = jnp.where(y > 0, y, NEG_SLOPE * y).astype(o_ref.dtype)


def _fused_gemm_bn_lrelu(xcolT, wf, shift, tm):
    k_pad, m_pad = xcolT.shape
    c_out = wf.shape[0]
    grid = (m_pad // tm,)

    flops = 2 * m_pad * k_pad * c_out
    bytes_accessed = (xcolT.size * xcolT.dtype.itemsize
                      + wf.size * wf.dtype.itemsize
                      + shift.size * shift.dtype.itemsize
                      + m_pad * c_out * 4)

    return pl.pallas_call(
        _gemm_bn_lrelu_kernel,
        out_shape=jax.ShapeDtypeStruct((c_out, m_pad), jnp.float32),
        grid_spec=pl.GridSpec(
            grid=grid,
            in_specs=[
                pl.BlockSpec((k_pad, tm), lambda i: (0, i)),      # streamed
                pl.BlockSpec((c_out, k_pad), lambda i: (0, 0)),   # resident
                pl.BlockSpec((c_out, 1), lambda i: (0, 0)),       # resident
            ],
            out_specs=pl.BlockSpec((c_out, tm), lambda i: (0, i)),
        ),
        compiler_params=pltpu.CompilerParams(
            dimension_semantics=("parallel",)),
        cost_estimate=pl.CostEstimate(
            flops=flops, transcendentals=0, bytes_accessed=bytes_accessed),
    )(xcolT, wf, shift)


# ---------------------------------------------------------------------------
# Glue: transposed im2col + parameter folding (plain JAX)
# ---------------------------------------------------------------------------
def _round_up(v, m):
    return ((v + m - 1) // m) * m


def _choose_m_tile(m_rows):
    """Pick a lane-dense (multiple of 128) M tile and padded M extent.

    512-row bf16 tiles keep the double-buffered (128, TM) input + (8, TM)
    output blocks far below every generation's scoped-VMEM default while
    amortising the ~0.35 us per-grid-step overhead.
    """
    if m_rows <= 512:
        tm = _round_up(m_rows, 128)
        return tm, tm
    tm = 512
    return tm, _round_up(m_rows, tm)


def _im2col_T(x):
    """x: (N, C, H, W) -> X_colT of shape (C*KH*KW, N*H_out*W_out).

    K ordering matches PyTorch's Conv2d weight flattening (c_in, kh, kw)."""
    N, C, H, W = x.shape
    x_pad = jnp.pad(x, ((0, 0), (0, 0), (PAD, PAD), (PAD, PAD)))
    H_out = (H + 2 * PAD - KH) // SH + 1
    W_out = (W + 2 * PAD - KW) // SW + 1

    patches = []
    for kh in range(KH):
        for kw in range(KW):
            sl = x_pad[:, :,
                       kh: kh + SH * H_out: SH,
                       kw: kw + SW * W_out: SW]        # (N, C, H_out, W_out)
            patches.append(sl)
    p = jnp.stack(patches, axis=0)                     # (KH*KW, N, C, Ho, Wo)
    p = jnp.transpose(p, (2, 0, 1, 3, 4))              # (C, KH*KW, N, Ho, Wo)
    xcolT = p.reshape(C * KH * KW, N * H_out * W_out)  # (K, M)
    return xcolT, (N, H_out, W_out)


@jax.jit
def singleconv2d_ad4_forward(x, conv_w, conv_b, bn_gamma, bn_beta,
                             bn_mean, bn_var):
    """x: (N, C_in, H, W) NCHW -> (N, C_out, H_out, W_out) NCHW."""
    C_out, C_in, kh, kw = conv_w.shape
    xcolT, (N, H_out, W_out) = _im2col_T(x)            # (K, M)
    K, M = xcolT.shape

    # Fold inference-mode BN + conv bias into the weights / a per-channel shift:
    #   y = ((conv + b) - mean) * gamma/sqrt(var+eps) + beta
    #     = conv * scale + (b*scale + beta - mean*scale)
    inv_std = jax.lax.rsqrt(bn_var + BN_EPS)
    scale = bn_gamma * inv_std                          # (C_out,)
    w_mat = conv_w.reshape(C_out, C_in * kh * kw)       # (C_out, K)
    wf = w_mat * scale[:, None]                         # scale folded into W
    shift = (conv_b * scale + bn_beta - bn_mean * scale).reshape(C_out, 1)

    # Pad K (72 -> 128) and M to a tile multiple; zeros are inert in the dot.
    K_pad = _round_up(K, 128)
    tm, M_pad = _choose_m_tile(M)
    xcolT_p = jnp.pad(xcolT, ((0, K_pad - K), (0, M_pad - M))).astype(jnp.bfloat16)
    wf_p = jnp.pad(wf, ((0, 0), (0, K_pad - K))).astype(jnp.bfloat16)

    out_t = _fused_gemm_bn_lrelu(xcolT_p, wf_p,
                                 shift.astype(jnp.float32), tm)  # (C_out, M_pad)
    out_t = out_t[:, :M]
    out = out_t.reshape(C_out, N, H_out, W_out)
    return jnp.transpose(out, (1, 0, 2, 3))             # cheap leading-axis swap


# ---------------------------------------------------------------------------
# Main
# ---------------------------------------------------------------------------
if __name__ == "__main__":
    key = jax.random.PRNGKey(0)
    k_x, k_w = jax.random.split(key, 2)

    N, C_in, H, W = 2, 4, 16, 16
    C_out = 8

    x = jax.random.normal(k_x, (N, C_in, H, W), dtype=jnp.float32)

    # Deterministic parameter init (synthetic; no checkpoint load).
    conv_w = 0.1 * jax.random.normal(k_w, (C_out, C_in, KH, KW),
                                     dtype=jnp.float32)
    conv_b = 0.01 * jnp.arange(C_out, dtype=jnp.float32)

    bn_gamma = 1.0 + 0.1 * jnp.arange(C_out, dtype=jnp.float32)
    bn_beta = 0.05 * jnp.arange(C_out, dtype=jnp.float32)
    bn_mean = jnp.zeros((C_out,), dtype=jnp.float32)   # PyTorch default stats
    bn_var = jnp.ones((C_out,), dtype=jnp.float32)

    out = singleconv2d_ad4_forward(x, conv_w, conv_b, bn_gamma, bn_beta,
                                   bn_mean, bn_var)
    jax.block_until_ready(out)

    H_out = (H + 2 * PAD - KH) // SH + 1
    W_out = (W + 2 * PAD - KW) // SW + 1
    assert out.shape == (N, C_out, H_out, W_out), out.shape
    assert bool(jnp.all(jnp.isfinite(out)))

    # Plain-JAX f32 reference (conv + inference BN + LeakyReLU).
    ref = jax.lax.conv_general_dilated(
        x, conv_w, window_strides=(SH, SW),
        padding=((PAD, PAD), (PAD, PAD)),
        dimension_numbers=("NCHW", "OIHW", "NCHW"))
    ref = ref + conv_b.reshape(1, C_out, 1, 1)
    inv_std = 1.0 / jnp.sqrt(bn_var + BN_EPS)
    ref = ((ref - bn_mean.reshape(1, C_out, 1, 1))
           * (bn_gamma * inv_std).reshape(1, C_out, 1, 1)
           + bn_beta.reshape(1, C_out, 1, 1))
    ref = jnp.where(ref > 0, ref, NEG_SLOPE * ref)

    max_err = float(jnp.max(jnp.abs(out - ref)))
    # bf16 streamed operands vs f32 reference -> small quantization error only.
    assert max_err < 1e-1, max_err

    print("KERNEL_OK")
</pallas_src>

<mosaic_0001>
module attributes {stable_mosaic.version = 11 : i64} {
  func.func @_gemm_bn_lrelu_kernel(%arg0: i32, %arg1: memref<128x128xbf16, #tpu.memory_space<vmem>>, %arg2: memref<8x128xbf16, #tpu.memory_space<vmem>>, %arg3: memref<8x1xf32, #tpu.memory_space<vmem>>, %arg4: memref<8x128xf32, #tpu.memory_space<vmem>>) attributes {dimension_semantics = [#tpu.dimension_semantics<parallel>], iteration_bounds = array<i64: 1>, scalar_prefetch = 0 : i64, scratch_operands = 0 : i64, tpu.core_type = #tpu.core_type<tc>, window_params = [{transform_indices = @transform_0, window_bounds = array<i64: 128, 128>}, {pipeline_mode = #tpu.pipeline_mode<synchronous>, transform_indices = @transform_1, window_bounds = array<i64: 8, 128>}, {pipeline_mode = #tpu.pipeline_mode<synchronous>, transform_indices = @transform_2, window_bounds = array<i64: 8, 1>}, {transform_indices = @transform_3, window_bounds = array<i64: 8, 128>}]} {
    %c0 = arith.constant 0 : index
    %c0_0 = arith.constant 0 : index
    %0 = vector.load %arg2[%c0, %c0_0] : memref<8x128xbf16, #tpu.memory_space<vmem>>, vector<8x128xbf16>
    %c0_1 = arith.constant 0 : index
    %c0_2 = arith.constant 0 : index
    %1 = vector.load %arg1[%c0_1, %c0_2] : memref<128x128xbf16, #tpu.memory_space<vmem>>, vector<128x128xbf16>
    %cst = arith.constant dense<0.000000e+00> : vector<8x128xf32>
    %2 = tpu.matmul %0, %1, %cst {dimension_numbers = #tpu.dot_dimension_numbers<[1], [0], [0], [1], [0, 0, 1, 1], [], []>} : vector<8x128xbf16>, vector<128x128xbf16>, vector<8x128xf32> -> vector<8x128xf32>
    %c0_3 = arith.constant 0 : index
    %c0_4 = arith.constant 0 : index
    %3 = vector.load %arg3[%c0_3, %c0_4] : memref<8x1xf32, #tpu.memory_space<vmem>>, vector<8x1xf32>
    %4 = vector.broadcast %3 : vector<8x1xf32> to vector<8x128xf32>
    %5 = arith.addf %2, %4 : vector<8x128xf32>
    %cst_5 = arith.constant 0.000000e+00 : f32
    %6 = vector.broadcast %cst_5 : f32 to vector<8x128xf32>
    %7 = arith.cmpf ogt, %5, %6 : vector<8x128xf32>
    %cst_6 = arith.constant 0.00999999977 : f32
    %8 = vector.broadcast %cst_6 : f32 to vector<8x128xf32>
    %9 = arith.mulf %8, %5 : vector<8x128xf32>
    %10 = arith.select %7, %5, %9 : vector<8x128xi1>, vector<8x128xf32>
    %c0_7 = arith.constant 0 : index
    %c0_8 = arith.constant 0 : index
    %11 = vector.load %arg4[%c0_7, %c0_8] : memref<8x128xf32, #tpu.memory_space<vmem>>, vector<8x128xf32>
    tpu.vector_store %arg4[%c0_7, %c0_8], %10 {strides = array<i32>} : memref<8x128xf32, #tpu.memory_space<vmem>>, vector<8x128xf32>,
    return
  }
  func.func @transform_0(%arg0: i32) -> (i32, i32) {
    %c0_i32 = arith.constant 0 : i32
    %c0_i32_0 = arith.constant 0 : i32
    return %c0_i32, %arg0 : i32, i32
  }
  func.func @transform_1(%arg0: i32) -> (i32, i32) {
    %c0_i32 = arith.constant 0 : i32
    %c0_i32_0 = arith.constant 0 : i32
    %c0_i32_1 = arith.constant 0 : i32
    return %c0_i32, %c0_i32_0 : i32, i32
  }
  func.func @transform_2(%arg0: i32) -> (i32, i32) {
    %c0_i32 = arith.constant 0 : i32
    %c0_i32_0 = arith.constant 0 : i32
    %c0_i32_1 = arith.constant 0 : i32
    return %c0_i32, %c0_i32_0 : i32, i32
  }
  func.func @transform_3(%arg0: i32) -> (i32, i32) {
    %c0_i32 = arith.constant 0 : i32
    %c0_i32_0 = arith.constant 0 : i32
    return %c0_i32, %arg0 : i32, i32
  }
}

</mosaic_0001>

<bundles_post_ra>
// kernel: singleconv2d_ad4_forward.1
= control target key start
LH: loop header
LB: loop body
LE: loop exit
PB: predicated region body
PF: predicated region fallthrough
CT: control target
= control target key end

     0   :  { %v148_v2 = vmov 0   ;;  %s202_s0 = inlined_call_operand.vmem [shape: bf16[128,128], index: 0, kind: input, shape index: {}]   ;;  %s203_s2 = inlined_call_operand.vmem [shape: f32[8,1], index: 2, kind: input, shape index: {}]   ;;  %s204_s1 = inlined_call_operand.vmem [shape: bf16[8,128], index: 1, kind: input, shape index: {}]   ;;  %s205_s3 = inlined_call_operand.vmem [shape: f32[8,128], index: 3, kind: output, shape index: {}]  }
   0x1   :  { %v145_v0 = vld [vmem:[%s202_s0 + $0x38] sm:$0xff]  ;;  %v144_v1 = vld [vmem:[%s202_s0 + $0x30] sm:$0xff]  ;;  %147 = vset.pattern.permute.xlu0 %v148_v2  ;;  %v31_v3 = vld [vmem:[%s203_s2] sm:$0xff] }
   0x2   :  { %85 = vmatpush.bf16.msra.mxu0 %v145_v0  ;;  %34 = vperm.xlu0 %147, %v31_v3   ;;  %v143_v4 = vld [vmem:[%s202_s0 + $0x28] sm:$0xff]  ;;  %v142_v5 = vld [vmem:[%s202_s0 + $0x20] sm:$0xff]  ;;  %v141_v6 = vld [vmem:[%s202_s0 + $0x18] sm:$0xff] }
   0x3   :  { %v140_v7 = vld [vmem:[%s202_s0 + $0x10] sm:$0xff]  ;;  %v139_v8 = vld [vmem:[%s202_s0 + $0x8] sm:$0xff]  ;;  %v138_v9 = vld [vmem:[%s202_s0] sm:$0xff] }
   0x4   :  { %v14_v10 = vld [vmem:[%s204_s1] sm:$0xf] }
   0x6   :  { %86 = vmatpush.bf16.msra.mxu0 %v144_v1 }
   0xa   :  { %87 = vmatpush.bf16.msra.mxu0 %v143_v4 }
   0xe   :  { %88 = vmatpush.bf16.msra.mxu0 %v142_v5 }
  0x12   :  { %89 = vmatpush.bf16.msra.mxu0 %v141_v6 }
  0x16   :  { %90 = vmatpush.bf16.msra.mxu0 %v140_v7 }
  0x1a   :  { %91 = vmatpush.bf16.msra.mxu0 %v139_v8 }
  0x1e   :  { %92 = vmatpush.bf16.msra.mxu0 %v138_v9 }
  0x21   :  { %93 = vmatmul.bf16.vlgmr.msra.gmra.mxu0 %v14_v10 }
  0x74   :  { %v35_v11 = vpop.permute.xlu0 %34 }
  0x9e   :  { %v94_v12 = vpop.f32.mrf.mxu0 }
  0x9f   :  { %v95_v13 = vadd.f32 %v94_v12, %v35_v11 }
  0xa1   :  { %vm98_vm0 = vcmp.gt.f32.partialorder %v95_v13, 0.0  ;;  %v99_v14 = vmul.f32 0.01, %v95_v13 }
  0xa3   :  { %v100_v15 = vsel %vm98_vm0, %v95_v13, %v99_v14 }
  0xa4   :  { %101 = vst [vmem:[%s205_s3] sm:$0xff] %v100_v15 }
  0xa6   :  { %v96_v16 = vpop.f32.mrf.mxu0 }

</bundles_post_ra>
